<compile_context>
chip_gen: v6e
topology: v6e:2x2x1
jax: 0.10.0
libtpu: 0.0.40
codegen_flags: <defaults>
</compile_context>

<pallas_src>
import jax
import jax.numpy as jnp
from jax.experimental import pallas as pl
from jax.experimental.pallas import tpu as pltpu


def ann_kernel(x_ref, w1_ref, b1_ref, w2r_ref, b2_ref, o_ref):
    # fc1 on the MXU: (TB, F) @ (F, H), f32 accumulation; bias + ReLU on the VPU.
    h = jnp.dot(x_ref[...], w1_ref[...], preferred_element_type=jnp.float32)
    h = jnp.maximum(h + b1_ref[...], 0.0)                       # (TB, H)

    # fc2 (output width 1): contract H with w2 laid out as a (1, H) row against
    # h.T, so the TB batch results come out lane-major -> lane-dense store.
    y = jnp.dot(w2r_ref[...], h.T, preferred_element_type=jnp.float32)  # (1, TB)

    # b2 is a scalar living in SMEM.
    o_ref[0] = y + b2_ref[0, 0]                                 # (1, TB) block


def _round_up(n, m):
    return (n + m - 1) // m * m


def ann_forward(x, w1, b1, w2, b2, *, tb=256):
    """Equivalent of fc2(relu(fc1(x))). x: (B, F), w1: (F, H), w2: (H, 1)."""
    B, F = x.shape
    H = w1.shape[1]

    # Batch tile: multiple of 8 sublanes, capped so VMEM stays tiny.
    TB = min(tb, _round_up(B, 8))
    Bp = _round_up(B, TB)
    if Bp != B:
        x = jnp.pad(x, ((0, Bp - B), (0, 0)))
    nb = Bp // TB

    w2r = w2.reshape(1, H)   # (H, 1) -> (1, H) row for the lane-major fc2

    out = pl.pallas_call(
        ann_kernel,
        out_shape=jax.ShapeDtypeStruct((nb, 1, TB), jnp.float32),
        grid=(nb,),
        in_specs=[
            # x: one (TB, F) batch tile per grid step (F == full dim, so legal).
            pl.BlockSpec((TB, F), lambda i: (i, 0)),
            # Weights / biases: full blocks, same index every step (resident).
            pl.BlockSpec((F, H), lambda i: (0, 0)),
            pl.BlockSpec((1, H), lambda i: (0, 0)),
            pl.BlockSpec((1, H), lambda i: (0, 0)),
            # b2: single scalar -> SMEM, no padded VMEM tile / extra DMA.
            pl.BlockSpec(memory_space=pltpu.MemorySpace.SMEM),
        ],
        # Lane-dense output slab: last two block dims are (1, TB).
        out_specs=pl.BlockSpec((1, 1, TB), lambda i: (i, 0, 0)),
        compiler_params=pltpu.CompilerParams(
            dimension_semantics=("parallel",),
        ),
    )(x, w1, b1, w2r, b2)

    # (nb, 1, TB) lane-major slab -> (B, 1) PyTorch-shaped result.
    return out.reshape(Bp, 1)[:B]


def init_params(key, input_size, hidden_size):
    # Deterministic init mimicking nn.Linear's U(-1/sqrt(fan_in), 1/sqrt(fan_in)).
    k1, k2, k3, k4 = jax.random.split(key, 4)
    bound1 = 1.0 / jnp.sqrt(jnp.float32(input_size))
    bound2 = 1.0 / jnp.sqrt(jnp.float32(hidden_size))
    w1 = jax.random.uniform(k1, (input_size, hidden_size), jnp.float32, -bound1, bound1)
    b1 = jax.random.uniform(k2, (1, hidden_size), jnp.float32, -bound1, bound1)
    w2 = jax.random.uniform(k3, (hidden_size, 1), jnp.float32, -bound2, bound2)
    b2 = jax.random.uniform(k4, (1, 1), jnp.float32, -bound2, bound2)
    return w1, b1, w2, b2


def _reference(x, w1, b1, w2, b2):
    return jnp.maximum(x @ w1 + b1, 0.0) @ w2 + b2


if __name__ == "__main__":
    input_size = 32
    hidden_size = 64

    key = jax.random.PRNGKey(0)
    kx, kx2, kp = jax.random.split(key, 3)
    w1, b1, w2, b2 = init_params(kp, input_size, hidden_size)

    # Small check (single tile, grid=(1,)).
    x = jax.random.normal(kx, (8, input_size), jnp.float32)
    out = ann_forward(x, w1, b1, w2, b2)
    jax.block_until_ready(out)
    ref = _reference(x, w1, b1, w2, b2)
    assert out.shape == (8, 1)
    assert jnp.allclose(out, ref, atol=1e-5, rtol=1e-5)

    # Larger check: exercises batch padding (300 -> 512) and the 2-step
    # "parallel" grid over batch tiles.
    x2 = jax.random.normal(kx2, (300, input_size), jnp.float32)
    out2 = ann_forward(x2, w1, b1, w2, b2)
    jax.block_until_ready(out2)
    ref2 = _reference(x2, w1, b1, w2, b2)
    assert out2.shape == (300, 1)
    assert jnp.allclose(out2, ref2, atol=1e-5, rtol=1e-5)

    print("KERNEL_OK")
</pallas_src>

<mosaic_0001>
module attributes {stable_mosaic.version = 11 : i64} {
  func.func @ann_kernel(%arg0: i32, %arg1: memref<8x32xf32, #tpu.memory_space<vmem>>, %arg2: memref<32x64xf32, #tpu.memory_space<vmem>>, %arg3: memref<1x64xf32, #tpu.memory_space<vmem>>, %arg4: memref<1x64xf32, #tpu.memory_space<vmem>>, %arg5: memref<1x1xf32, #tpu.memory_space<smem>>, %arg6: memref<1x1x8xf32, #tpu.memory_space<vmem>>) attributes {dimension_semantics = [#tpu.dimension_semantics<parallel>], iteration_bounds = array<i64: 1>, scalar_prefetch = 0 : i64, scratch_operands = 0 : i64, tpu.core_type = #tpu.core_type<tc>, window_params = [{transform_indices = @transform_0, window_bounds = array<i64: 8, 32>}, {pipeline_mode = #tpu.pipeline_mode<synchronous>, transform_indices = @transform_1, window_bounds = array<i64: 32, 64>}, {pipeline_mode = #tpu.pipeline_mode<synchronous>, transform_indices = @transform_2, window_bounds = array<i64: 1, 64>}, {pipeline_mode = #tpu.pipeline_mode<synchronous>, transform_indices = @transform_3, window_bounds = array<i64: 1, 64>}, {transform_indices = @transform_4, window_bounds = array<i64: 1, 1>}, {transform_indices = @transform_5, window_bounds = array<i64: 1, 1, 8>}]} {
    %c0 = arith.constant 0 : index
    %c0_0 = arith.constant 0 : index
    %0 = vector.load %arg1[%c0, %c0_0] : memref<8x32xf32, #tpu.memory_space<vmem>>, vector<8x32xf32>
    %c0_1 = arith.constant 0 : index
    %c0_2 = arith.constant 0 : index
    %1 = vector.load %arg2[%c0_1, %c0_2] : memref<32x64xf32, #tpu.memory_space<vmem>>, vector<32x64xf32>
    %cst = arith.constant dense<0.000000e+00> : vector<8x64xf32>
    %2 = tpu.matmul %0, %1, %cst {dimension_numbers = #tpu.dot_dimension_numbers<[1], [0], [0], [1], [0, 0, 1, 1], [], []>} : vector<8x32xf32>, vector<32x64xf32>, vector<8x64xf32> -> vector<8x64xf32>
    %c0_3 = arith.constant 0 : index
    %c0_4 = arith.constant 0 : index
    %3 = vector.load %arg3[%c0_3, %c0_4] : memref<1x64xf32, #tpu.memory_space<vmem>>, vector<1x64xf32>
    %4 = vector.broadcast %3 : vector<1x64xf32> to vector<8x64xf32>
    %5 = arith.addf %2, %4 : vector<8x64xf32>
    %cst_5 = arith.constant 0.000000e+00 : f32
    %6 = vector.broadcast %cst_5 : f32 to vector<8x64xf32>
    %7 = arith.maximumf %5, %6 : vector<8x64xf32>
    %c0_6 = arith.constant 0 : index
    %c0_7 = arith.constant 0 : index
    %8 = vector.load %arg4[%c0_6, %c0_7] : memref<1x64xf32, #tpu.memory_space<vmem>>, vector<1x64xf32>
    %9 = tpu.transpose %7, [1, 0] : vector<8x64xf32> -> vector<64x8xf32>
    %cst_8 = arith.constant dense<0.000000e+00> : vector<1x8xf32>
    %10 = tpu.matmul %8, %9, %cst_8 {dimension_numbers = #tpu.dot_dimension_numbers<[1], [0], [0], [1], [0, 0, 1, 1], [], []>} : vector<1x64xf32>, vector<64x8xf32>, vector<1x8xf32> -> vector<1x8xf32>
    %c0_9 = arith.constant 0 : index
    %c0_10 = arith.constant 0 : index
    %11 = memref.load %arg5[%c0_9, %c0_10] : memref<1x1xf32, #tpu.memory_space<smem>>
    %12 = vector.broadcast %11 : f32 to vector<1x8xf32>
    %13 = arith.addf %10, %12 : vector<1x8xf32>
    %c0_11 = arith.constant 0 : index
    %c0_12 = arith.constant 0 : index
    %c0_13 = arith.constant 0 : index
    %14 = vector.load %arg6[%c0_11, %c0_12, %c0_13] : memref<1x1x8xf32, #tpu.memory_space<vmem>>, vector<1x1x8xf32>
    %15 = vector.shape_cast %14 : vector<1x1x8xf32> to vector<1x8xf32>
    %16 = vector.shape_cast %13 : vector<1x8xf32> to vector<1x1x8xf32>
    tpu.vector_store %arg6[%c0_11, %c0_12, %c0_13], %16 {strides = array<i32>} : memref<1x1x8xf32, #tpu.memory_space<vmem>>, vector<1x1x8xf32>,
    return
  }
  func.func @transform_0(%arg0: i32) -> (i32, i32) {
    %c0_i32 = arith.constant 0 : i32
    %c0_i32_0 = arith.constant 0 : i32
    return %arg0, %c0_i32 : i32, i32
  }
  func.func @transform_1(%arg0: i32) -> (i32, i32) {
    %c0_i32 = arith.constant 0 : i32
    %c0_i32_0 = arith.constant 0 : i32
    %c0_i32_1 = arith.constant 0 : i32
    return %c0_i32, %c0_i32_0 : i32, i32
  }
  func.func @transform_2(%arg0: i32) -> (i32, i32) {
    %c0_i32 = arith.constant 0 : i32
    %c0_i32_0 = arith.constant 0 : i32
    %c0_i32_1 = arith.constant 0 : i32
    return %c0_i32, %c0_i32_0 : i32, i32
  }
  func.func @transform_3(%arg0: i32) -> (i32, i32) {
    %c0_i32 = arith.constant 0 : i32
    %c0_i32_0 = arith.constant 0 : i32
    %c0_i32_1 = arith.constant 0 : i32
    return %c0_i32, %c0_i32_0 : i32, i32
  }
  func.func @transform_4(%arg0: i32) -> (i32, i32) {
    %c0_i32 = arith.constant 0 : i32
    %c0_i32_0 = arith.constant 0 : i32
    %c0_i32_1 = arith.constant 0 : i32
    return %c0_i32, %c0_i32_0 : i32, i32
  }
  func.func @transform_5(%arg0: i32) -> (i32, i32, i32) {
    %c0_i32 = arith.constant 0 : i32
    %c0_i32_0 = arith.constant 0 : i32
    %c0_i32_1 = arith.constant 0 : i32
    return %arg0, %c0_i32, %c0_i32_0 : i32, i32, i32
  }
}

</mosaic_0001>

<bundles_post_ra>
// kernel: tpu_custom_call.1
= control target key start
LH: loop header
LB: loop body
LE: loop exit
PB: predicated region body
PF: predicated region fallthrough
CT: control target
= control target key end

     0   :  { %11 = vsyncpa [#allocation4], 0  ;;  %s388_s0 = inlined_call_operand.hbm [shape: f32[8,32], index: 0, kind: input, shape index: {}]   ;;  %s389_s1 = inlined_call_operand.hbm [shape: f32[32,64], index: 1, kind: input, shape index: {}]   ;;  %s390_s2 = inlined_call_operand.vmem [shape: f32[1,64], index: 2, kind: input, shape index: {}]   ;;  %s391_s3 = inlined_call_operand.vmem [shape: f32[1,64], index: 3, kind: input, shape index: {}]   ;;  %s392_s4 = inlined_call_operand.<no memory space> [shape: f32[1,1], index: 4, kind: input, shape index: {}]   ;;  %s393_s5 = inlined_call_operand.hbm [shape: f32[1,1,8], index: 5, kind: output, shape index: {}]  }
   0x1   :  { %12 = vsyncpa [#allocation7], 0 }
   0x2   :  { %13 = vsyncpa [#allocation5], 0  ;;  %s333_s18 = smov [#allocation3]   ;;  %s334_s20 = smov [#allocation6]  }
   0x3   :  { %s20_s19 = sshll.u32 %s333_s18, 4  ;;  %s29_s21 = sshll.u32 %s334_s20, 4  ;;  %s21_s19 = int_to_ptr.vmem [resolvable:$true] %s20_s19  ;;  %s30_s21 = int_to_ptr.vmem [resolvable:$true] %s29_s21 }
   0x4   :  { %s275_s22 = scalar_lea.vmem %s21_s19, 128  ;;  %p280_p1 = scmp.lt.s32.totalorder %s21_s19, %s21_s19 }
   0x5   :  { %p276_p0 = scmp.ne.s32.totalorder %s21_s19, %s275_s22  ;;  %p281_p2 = scmp.lt.s32.totalorder %s275_s22, %s275_s22 }
   0x7   :  { %p282_p3 = por %p281_p2, %p280_p1 }
   0x9   :  { %p283_p4 = pnand %p282_p3, %p276_p0 }
   0xb   :  { %286 = shalt.err (!%p283_p4)
}
   0xc   :  { %23 = dma.hbm_to_vmem [thread:$0]  %s388_s0, 128, %s21_s19, [#allocation4]  }
   0xd   :  { %s295_s25 = scalar_lea.vmem %s30_s21, 512  ;;  %p300_p6 = scmp.lt.s32.totalorder %s30_s21, %s30_s21 }
   0xe   :  { %p296_p5 = scmp.ne.s32.totalorder %s30_s21, %s295_s25  ;;  %p301_p7 = scmp.lt.s32.totalorder %s295_s25, %s295_s25 }
  0x10   :  { %p302_p8 = por %p301_p7, %p300_p6 }
  0x12   :  { %p303_p9 = pnand %p302_p8, %p296_p5 }
  0x14   :  { %306 = shalt.err (!%p303_p9)
}
  0x15   :  { %s335_s26 = smov 128   ;;  %s336_s27 = smov 8  }
  0x16   :  { %35 = dma.hbm_to_vmem [thread:$0]  %s389_s1, 512, %s30_s21, [#allocation7], %s335_s26, %s335_s26, %s336_s27  }
  0x17   :  { %327 = dma.done.wait [#allocation4], 128  }
  0x18   :  { %328 = vsyncadd [#allocation4], 4294967168 }
  0x19   :  { %329 = dma.done.wait [#allocation7], 512  }
  0x1a   :  { %330 = vsyncadd [#allocation7], 4294966784  ;;  %v337_v0 = vmov 0.0   ;;  %vm338_vm0 = vmmov 0   ;;  %v52_v1 = vld [vmem:[#allocation6 + $0x18] sm:$0xff]  ;;  %v51_v2 = vld [vmem:[#allocation6 + $0x10] sm:$0xff]  ;;  %v137_v12 = vstv %s392_s4 }
  0x1b   :  { %244 = vmatprep.subr.mxu0 %v337_v0  ;;  %252 = vmatprep.mubr.msk.f32.mxu0 %vm338_vm0, %v337_v0  ;;  %v50_v3 = vld [vmem:[#allocation6 + $0x8] sm:$0xff]  ;;  %v49_v4 = vld [vmem:[#allocation6] sm:$0xff]  ;;  %v48_v5 = vld [vmem:[#allocation3] sm:$0xff]  ;;  %vm60_vm1 = vcmask 261120   ;;  %vm138_vm2 = vcmask 523264   ;;  %s339_s9 = smov [#allocation8]  }
  0x1c   :  { %255 = vmatprep.subr.mxu1 %v337_v0  ;;  %257 = vmatprep.mubr.msk.f32.mxu1 %vm338_vm0, %v337_v0  ;;  %v233_v6 = vld [vmem:[%s390_s2] ss:$0 sm:$0xff]  ;;  %s223_s10 = sshll.u32 %s339_s9, 4  ;;  %vm215_vm3 = vcmask 57344   ;;  %s224_s10 = int_to_ptr.vmem [resolvable:$true] %s223_s10 }
  0x1d   :  { %245 = vmatpush3.msra.mxu0 %v52_v1  ;;  %v135_v11 = vld [vmem:[%s391_s3] sm:$0x1]  ;;  %s307_s2 = scalar_lea.vmem %s224_s10, 16  ;;  %s311_s11 = scalar_lea.vmem %s224_s10, 32 }
  0x1e   :  { %246 = vmatprep.subr.mxu0 %v337_v0  ;;  %p308_p10 = scmp.ne.s32.totalorder %s224_s10, %s307_s2  ;;  %p312_p11 = scmp.lt.s32.totalorder %s224_s10, %s224_s10 }
  0x1f   :  { %247 = vmatpush3.msra.mxu0 %v51_v2  ;;  %p313_p12 = scmp.lt.s32.totalorder %s311_s11, %s307_s2 }
  0x20   :  { %248 = vmatprep.subr.mxu0 %v337_v0 }
  0x21   :  { %249 = vmatpush3.msra.mxu0 %v50_v3  ;;  %p314_p13 = por %p313_p12, %p312_p11 }
  0x22   :  { %250 = vmatprep.subr.mxu0 %v337_v0 }
  0x23   :  { %251 = vmatpush3.msra.mxu0 %v49_v4  ;;  %p315_p0 = pnand %p314_p13, %p308_p10 }
  0x24   :  { %253 = vmatmul.mubr.msk.f32.vlgmr.msra.gmra.mxu0 %vm60_vm1, %v48_v5 }
  0xe4   :  { %v130_v7 = vpop.f32.mrf.mxu0 }
  0xe5   :  { %v131_v8 = vadd.f32 %v233_v6, %v130_v7 }
  0xe6   :  { %v254_v9 = vpop.f32.mrf.mxu0 }
  0xe7   :  { %v134_v10 = vmax.f32 %v131_v8, 0.0 }
  0xe9   :  { %256 = vmatpush3.xpose.msk.msra.mxu1 %vm138_vm2, %v134_v10 }
  0xec   :  { %258 = vmatmul.mubr.msk.f32.vlgmr.msra.gmra.mxu1 %vm138_vm2, %v135_v11 }
 0x1ac   :  { %v211_v13 = vpop.f32.mrf.mxu1 }
 0x1ad   :  { %v212_v14 = vadd.f32 %v211_v13, %v137_v12 }
 0x1ae   :  { %v259_v15 = vpop.f32.mrf.mxu1 }
 0x1af   :  { %216 = vst.msk [vmem:[#allocation8] sm:$0x1] %vm215_vm3, %v212_v14 }
 0x1b0   :  { %318 = shalt.err (!%p315_p0)
}
 0x1b1   :  { %226 = dma.vmem_to_hbm [thread:$0]  %s224_s10, 16, %s393_s5, [#allocation5]  }
 0x1b2   :  { %331 = dma.done.wait [#allocation5], 16  }
 0x1b3   :  { %332 = vsyncadd [#allocation5], 4294967280 }
 0x1b4   :  { %230 = vsyncpa [#allocation4], 1 }
 0x1b5   :  { %231 = vsyncpa [#allocation7], 1 }
 0x1b6   :  { %232 = vsyncpa [#allocation5], 1 }

</bundles_post_ra>
